<compile_context>
chip_gen: v7x
topology: tpu7x:2x2x1
jax: 0.10.0
libtpu: 0.0.40
codegen_flags: <defaults>
</compile_context>

<pallas_src>
import math

import jax
import jax.numpy as jnp
from jax.scipy.linalg import block_diag
from jax.experimental import pallas as pl
from jax.experimental.pallas import tpu as pltpu


def _round_up(x: int, m: int) -> int:
    return ((x + m - 1) // m) * m


def _choose_d_tile(d: int, bw: int, target: int = 256) -> int:
    """Head-aligned, MXU-friendly width tile (multiple of 128), else the full width."""
    n_heads = max(d // bw, 1)
    cands = []
    for g in range(1, n_heads + 1):
        if n_heads % g:
            continue
        tdc = g * bw
        if tdc == d or tdc % 128 == 0:
            cands.append(tdc)
    if not cands:
        return d
    ge = [t for t in cands if t >= target]
    return min(ge) if ge else max(cands)


def _group_block_diag(w_heads, heads_per_group):
    """(H, bw, bw) per-head weights -> (nd, td, td) block-diagonal matrices per head group."""
    H = w_heads.shape[0]
    groups = [block_diag(*[w_heads[h] for h in range(g, g + heads_per_group)])
              for g in range(0, H, heads_per_group)]
    return jnp.stack(groups)


def _make_rglru_kernel(tt: int, tb: int, td: int, *, with_reset: bool, unroll: int):
    rows = tt * tb  # rows of one block, ordered (t, b_in_tile)

    def _body(x_ref, r_ref, wx_ref, bx_ref, wa_ref, ba_ref, nsa_ref,
              o_ref, a_sc, nx_sc, h_sc):
        ti = pl.program_id(2)

        x = x_ref[...]                                           # (rows, td), native dtype
        # Gates: per-head block-diagonal linear densified per head-group -> plain MXU matmuls
        # in the input dtype (bf16 inputs run at native bf16 MXU rate), accumulated in f32.
        gate_x = jax.nn.sigmoid(
            jnp.dot(x, wx_ref[0], preferred_element_type=jnp.float32) + bx_ref[0])
        gate_a = jax.nn.sigmoid(
            jnp.dot(x, wa_ref[0], preferred_element_type=jnp.float32) + ba_ref[0])

        log_a = gate_a * nsa_ref[0]          # nsa = -8 * softplus(a_param), precomputed
        a = jnp.exp(log_a)
        mult = jnp.sqrt(1.0 - a * a)         # a*a == exp(2*log_a)  (VPU instead of EUP)

        if with_reset:
            r = r_ref[...].astype(jnp.float32)                   # (rows, 1), 1.0 at starts
        else:
            # s=None path: reset only at global t == 0, i.e. the first TB rows of time-tile 0.
            rpos = jax.lax.broadcasted_iota(jnp.int32, (rows, 1), 0)
            r = jnp.where(jnp.logical_and(rpos < tb, ti == 0), 1.0, 0.0)
        one_m_r = 1.0 - r
        a = a * one_m_r                      # reset rows: a = 0
        mult = r + one_m_r * mult            # reset rows: multiplier = 1
        nx = x.astype(jnp.float32) * gate_x * mult

        a_sc[...] = a
        nx_sc[...] = nx

        @pl.when(ti == 0)
        def _():
            h_sc[...] = jnp.zeros_like(h_sc)

        # Serial recurrence.  h lives in vregs (loop carry); h_sc is only read once here
        # and written once at the end (cross-time-tile carry).  Every step touches a full,
        # unmasked (TB, td) slab thanks to the time-major row layout.
        def step(t, h):
            i = pl.multiple_of(t * tb, tb)
            h = a_sc[pl.ds(i, tb)] * h + nx_sc[pl.ds(i, tb)]
            o_ref[pl.ds(i, tb)] = h.astype(o_ref.dtype)
            return h

        h_sc[...] = jax.lax.fori_loop(0, tt, step, h_sc[...], unroll=unroll)

    if with_reset:
        def kernel(x_ref, r_ref, wx_ref, bx_ref, wa_ref, ba_ref, nsa_ref,
                   o_ref, a_sc, nx_sc, h_sc):
            _body(x_ref, r_ref, wx_ref, bx_ref, wa_ref, ba_ref, nsa_ref,
                  o_ref, a_sc, nx_sc, h_sc)
    else:
        def kernel(x_ref, wx_ref, bx_ref, wa_ref, ba_ref, nsa_ref,
                   o_ref, a_sc, nx_sc, h_sc):
            _body(x_ref, None, wx_ref, bx_ref, wa_ref, ba_ref, nsa_ref,
                  o_ref, a_sc, nx_sc, h_sc)
    return kernel


def _rglru_pallas(x_btd, reset_bt, wx, bx, wa, ba, nsa, *, td, tb=8, tt=128):
    """x_btd: [B, T, D]; reset_bt: [B, T] float32 (1.0 at sequence starts) or None."""
    B, T, D = x_btd.shape
    nd = D // td

    TB = min(tb, B)
    Bp = _round_up(B, TB)
    NB = Bp // TB
    TT = min(tt, _round_up(T, 8))
    TT = max(8, TT - TT % 8)
    Tp = _round_up(T, TT)
    NT = Tp // TT
    rows_per_block = TT * TB

    if (Bp, Tp) != (B, T):
        x_btd = jnp.pad(x_btd, ((0, Bp - B), (0, Tp - T), (0, 0)))
        if reset_bt is not None:
            reset_bt = jnp.pad(reset_bt, ((0, Bp - B), (0, Tp - T)))

    # Time-major row layout: row = (nb * Tp + t) * TB + b_in_tile.
    # One grid block is TT*TB contiguous rows -> lane-dense blocks, unmasked per-step slabs.
    x2d = x_btd.reshape(NB, TB, Tp, D).transpose(0, 2, 1, 3).reshape(NB * Tp * TB, D)

    with_reset = reset_bt is not None
    args = [x2d]
    in_specs = [pl.BlockSpec((rows_per_block, td),
                             lambda di, nbi, ti: (nbi * NT + ti, di))]
    if with_reset:
        r2d = reset_bt.reshape(NB, TB, Tp).transpose(0, 2, 1).reshape(NB * Tp * TB, 1)
        args.append(r2d)
        in_specs.append(pl.BlockSpec((rows_per_block, 1),
                                     lambda di, nbi, ti: (nbi * NT + ti, 0)))
    args += [wx, bx, wa, ba, nsa]
    in_specs += [
        pl.BlockSpec((1, td, td), lambda di, nbi, ti: (di, 0, 0)),   # W input-gate group
        pl.BlockSpec((1, 1, td), lambda di, nbi, ti: (di, 0, 0)),    # b input-gate
        pl.BlockSpec((1, td, td), lambda di, nbi, ti: (di, 0, 0)),   # W a-gate group
        pl.BlockSpec((1, 1, td), lambda di, nbi, ti: (di, 0, 0)),    # b a-gate
        pl.BlockSpec((1, 1, td), lambda di, nbi, ti: (di, 0, 0)),    # -8*softplus(a_param)
    ]

    unroll = TT if TT <= 16 else 8
    kernel = _make_rglru_kernel(TT, TB, td, with_reset=with_reset, unroll=unroll)

    y2d = pl.pallas_call(
        kernel,
        out_shape=jax.ShapeDtypeStruct((NB * Tp * TB, D), x_btd.dtype),
        grid_spec=pltpu.PrefetchScalarGridSpec(
            num_scalar_prefetch=0,
            grid=(nd, NB, NT),           # time innermost: sequential state carry per (d, b) tile
            in_specs=in_specs,
            out_specs=pl.BlockSpec((rows_per_block, td),
                                   lambda di, nbi, ti: (nbi * NT + ti, di)),
            scratch_shapes=[
                pltpu.VMEM((rows_per_block, td), jnp.float32),   # a (decay) for this tile
                pltpu.VMEM((rows_per_block, td), jnp.float32),   # normalized_x (f32 staging)
                pltpu.VMEM((TB, td), jnp.float32),               # carried hidden state
            ],
        ),
        compiler_params=pltpu.CompilerParams(
            dimension_semantics=("parallel", "parallel", "arbitrary"),
            vmem_limit_bytes=48 * 1024 * 1024,
        ),
    )(*args)

    y = y2d.reshape(NB, Tp, TB, D).transpose(0, 2, 1, 3).reshape(Bp, Tp, D)
    return y[:B, :T]


def rglru_forward(x, params, s=None, *, tb=8, tt=128):
    """Mirrors RGLRU.forward.

    x: [B, T, D] when s is None (training path), else [N, D] flat token stream.
    s: optional [N] segment ids (reset whenever the id changes).
    """
    w_xh, b_xh = params["ig_w"], params["ig_b"]
    w_ah, b_ah = params["ag_w"], params["ag_b"]
    a_param = params["a_param"]
    H, bw, _ = w_xh.shape
    D = H * bw

    # Tile the width at head-group boundaries: each D tile holds `hpg` whole heads densified
    # to a (td, td) block-diagonal matrix (instead of one (D, D) dense matrix).
    td = _choose_d_tile(D, bw)
    nd = D // td
    hpg = td // bw
    Wx = _group_block_diag(w_xh, hpg).astype(x.dtype)    # MXU operands in the input dtype
    Wa = _group_block_diag(w_ah, hpg).astype(x.dtype)
    bx = b_xh.reshape(nd, 1, td).astype(jnp.float32)
    ba = b_ah.reshape(nd, 1, td).astype(jnp.float32)
    # Hoisted out of the kernel: -8 * softplus(a_param).
    nsa = (-8.0 * jax.nn.softplus(a_param.astype(jnp.float32))).reshape(nd, 1, td)

    if s is None:
        # Reset mask (t == 0) is built in-kernel from the grid index; no reset tensor at all.
        return _rglru_pallas(x, None, Wx, bx, Wa, ba, nsa, td=td, tb=tb, tt=tt)

    # Flat stream with user-provided segment ids: reset at position 0 and at id changes.
    N = x.shape[0]
    r = jnp.ones((N,), jnp.float32).at[1:].set((s[1:] != s[:-1]).astype(jnp.float32))
    y = _rglru_pallas(x[None], r[None], Wx, bx, Wa, ba, nsa, td=td, tb=tb, tt=tt)
    return y[0]


def init_rglru_params(key, width: int, num_heads: int, w_init_variance_scale: float = 1.0):
    bw = width // num_heads
    k1, k2, k3 = jax.random.split(key, 3)
    std = math.sqrt(w_init_variance_scale / bw)
    ig_w = std * jax.random.normal(k1, (num_heads, bw, bw), jnp.float32)
    ag_w = std * jax.random.normal(k2, (num_heads, bw, bw), jnp.float32)
    ig_b = jnp.zeros((num_heads, bw), jnp.float32)
    ag_b = jnp.zeros((num_heads, bw), jnp.float32)
    # rnn_param_init(min_rad=0.9, max_rad=0.999, transform="softplus")
    min_rad, max_rad, eps = 0.9, 0.999, 1e-8
    u = jax.random.uniform(k3, (width,), jnp.float32,
                           minval=min_rad ** 2 + eps, maxval=max_rad ** 2 + eps)
    t = 0.5 * jnp.log(u)
    a_param = jnp.log(jnp.exp(-t) - 1.0)
    return dict(ig_w=ig_w, ig_b=ig_b, ag_w=ag_w, ag_b=ag_b, a_param=a_param)


def rglru_reference(x, params, s=None):
    """Pure-JAX reference, literal transcription of the torch forward."""
    w_x, b_x = params["ig_w"], params["ig_b"]
    w_a, b_a = params["ag_w"], params["ag_b"]
    a_param = params["a_param"]
    H, bw, _ = w_x.shape

    def bdl(z, w, b):
        zh = z.reshape(z.shape[:-1] + (H, bw))
        y = jnp.einsum("...hi,hij->...hj", zh, w) + b
        return y.reshape(z.shape)

    if s is None:
        B, T, _ = x.shape
        reset = jnp.zeros((B, T), bool).at[:, 0].set(True)
    else:
        reset = jnp.ones((x.shape[0],), bool).at[1:].set(s[1:] != s[:-1])

    gate_x = jax.nn.sigmoid(bdl(x, w_x, b_x))
    gate_a = jax.nn.sigmoid(bdl(x, w_a, b_a))
    log_a = -8.0 * gate_a * jax.nn.softplus(a_param)
    a = jnp.exp(log_a)
    a_square = jnp.exp(2.0 * log_a)
    gated_x = x * gate_x
    multiplier = jnp.sqrt(1.0 - a_square)
    multiplier = jnp.where(reset[..., None], 1.0, multiplier)
    normalized_x = gated_x * multiplier
    a = jnp.where(reset[..., None], 0.0, a)

    D = x.shape[-1]
    a_flat = a.reshape(-1, D)
    nx_flat = normalized_x.reshape(-1, D)

    def step(h, inp):
        a_t, x_t = inp
        h = a_t * h + x_t
        return h, h

    _, ys = jax.lax.scan(step, jnp.zeros((D,), jnp.float32), (a_flat, nx_flat))
    return ys.reshape(x.shape).astype(x.dtype)


if __name__ == "__main__":
    D, H = 32, 4
    key = jax.random.PRNGKey(0)
    kx, kp, ks, km = jax.random.split(key, 4)
    params = init_rglru_params(kp, width=D, num_heads=H)

    # 1) Training path (s=None), single tile: [B=2, T=8, D=32].
    x = jax.random.normal(kx, (2, 8, D), jnp.float32)
    y = jax.block_until_ready(rglru_forward(x, params, s=None))
    assert y.shape == (2, 8, D)
    err = float(jnp.max(jnp.abs(y - rglru_reference(x, params, s=None))))
    assert err < 1e-3, f"s=None path max abs err {err}"

    # 2) Multi-tile path: exercises batch tiling, time tiling and the cross-time-tile
    #    hidden-state carry by comparing a tiled run to a single-tile run of the same kernel.
    x2 = jax.random.normal(km, (16, 40, D), jnp.float32)
    y_tiled = jax.block_until_ready(rglru_forward(x2, params, s=None, tb=8, tt=16))
    y_whole = jax.block_until_ready(rglru_forward(x2, params, s=None, tb=16, tt=64))
    err2 = float(jnp.max(jnp.abs(y_tiled - y_whole)))
    assert err2 < 1e-4, f"tiling consistency max abs err {err2}"

    # 3) Segment-id path: flat [N, D] stream, reset at segment boundaries.
    N = 12
    xf = jax.random.normal(ks, (N, D), jnp.float32)
    seg = jnp.array([0] * 5 + [1] * 4 + [2] * 3, jnp.int32)
    yf = jax.block_until_ready(rglru_forward(xf, params, s=seg))
    assert yf.shape == (N, D)
    errf = float(jnp.max(jnp.abs(yf - rglru_reference(xf, params, s=seg))))
    assert errf < 1e-3, f"segment path max abs err {errf}"

    print("KERNEL_OK")
</pallas_src>

<mosaic_0001>
module attributes {stable_mosaic.version = 11 : i64} {
  func.func @kernel(%arg0: i32, %arg1: i32, %arg2: i32, %arg3: memref<16x32xf32, #tpu.memory_space<vmem>>, %arg4: memref<1x32x32xf32, #tpu.memory_space<vmem>>, %arg5: memref<1x1x32xf32, #tpu.memory_space<vmem>>, %arg6: memref<1x32x32xf32, #tpu.memory_space<vmem>>, %arg7: memref<1x1x32xf32, #tpu.memory_space<vmem>>, %arg8: memref<1x1x32xf32, #tpu.memory_space<vmem>>, %arg9: memref<16x32xf32, #tpu.memory_space<vmem>>, %arg10: memref<16x32xf32, #tpu.memory_space<vmem>>, %arg11: memref<16x32xf32, #tpu.memory_space<vmem>>, %arg12: memref<2x32xf32, #tpu.memory_space<vmem>>) attributes {dimension_semantics = [#tpu.dimension_semantics<parallel>, #tpu.dimension_semantics<parallel>, #tpu.dimension_semantics<arbitrary>], iteration_bounds = array<i64: 1, 1, 1>, scalar_prefetch = 0 : i64, scratch_operands = 3 : i64, tpu.core_type = #tpu.core_type<tc>, window_params = [{transform_indices = @transform_0, window_bounds = array<i64: 16, 32>}, {transform_indices = @transform_1, window_bounds = array<i64: 1, 32, 32>}, {transform_indices = @transform_2, window_bounds = array<i64: 1, 1, 32>}, {transform_indices = @transform_3, window_bounds = array<i64: 1, 32, 32>}, {transform_indices = @transform_4, window_bounds = array<i64: 1, 1, 32>}, {transform_indices = @transform_5, window_bounds = array<i64: 1, 1, 32>}, {transform_indices = @transform_6, window_bounds = array<i64: 16, 32>}]} {
    %c0 = arith.constant 0 : index
    %c0_0 = arith.constant 0 : index
    %0 = vector.load %arg3[%c0, %c0_0] : memref<16x32xf32, #tpu.memory_space<vmem>>, vector<16x32xf32>
    %c0_1 = arith.constant 0 : index
    %c0_2 = arith.constant 0 : index
    %c0_3 = arith.constant 0 : index
    %1 = vector.load %arg4[%c0_1, %c0_2, %c0_3] : memref<1x32x32xf32, #tpu.memory_space<vmem>>, vector<1x32x32xf32>
    %2 = vector.shape_cast %1 : vector<1x32x32xf32> to vector<32x32xf32>
    %cst = arith.constant dense<0.000000e+00> : vector<16x32xf32>
    %3 = tpu.matmul %0, %2, %cst {dimension_numbers = #tpu.dot_dimension_numbers<[1], [0], [0], [1], [0, 0, 1, 1], [], []>} : vector<16x32xf32>, vector<32x32xf32>, vector<16x32xf32> -> vector<16x32xf32>
    %c0_4 = arith.constant 0 : index
    %c0_5 = arith.constant 0 : index
    %c0_6 = arith.constant 0 : index
    %4 = vector.load %arg5[%c0_4, %c0_5, %c0_6] : memref<1x1x32xf32, #tpu.memory_space<vmem>>, vector<1x1x32xf32>
    %5 = vector.shape_cast %4 : vector<1x1x32xf32> to vector<1x32xf32>
    %6 = vector.broadcast %5 : vector<1x32xf32> to vector<16x32xf32>
    %7 = arith.addf %3, %6 : vector<16x32xf32>
    %8 = arith.negf %7 : vector<16x32xf32>
    %9 = math.exp %8 : vector<16x32xf32>
    %cst_7 = arith.constant 1.000000e+00 : f32
    %10 = vector.broadcast %cst_7 : f32 to vector<16x32xf32>
    %11 = arith.addf %10, %9 : vector<16x32xf32>
    %12 = arith.divf %10, %11 : vector<16x32xf32>
    %c0_8 = arith.constant 0 : index
    %c0_9 = arith.constant 0 : index
    %c0_10 = arith.constant 0 : index
    %13 = vector.load %arg6[%c0_8, %c0_9, %c0_10] : memref<1x32x32xf32, #tpu.memory_space<vmem>>, vector<1x32x32xf32>
    %14 = vector.shape_cast %13 : vector<1x32x32xf32> to vector<32x32xf32>
    %cst_11 = arith.constant dense<0.000000e+00> : vector<16x32xf32>
    %15 = tpu.matmul %0, %14, %cst_11 {dimension_numbers = #tpu.dot_dimension_numbers<[1], [0], [0], [1], [0, 0, 1, 1], [], []>} : vector<16x32xf32>, vector<32x32xf32>, vector<16x32xf32> -> vector<16x32xf32>
    %c0_12 = arith.constant 0 : index
    %c0_13 = arith.constant 0 : index
    %c0_14 = arith.constant 0 : index
    %16 = vector.load %arg7[%c0_12, %c0_13, %c0_14] : memref<1x1x32xf32, #tpu.memory_space<vmem>>, vector<1x1x32xf32>
    %17 = vector.shape_cast %16 : vector<1x1x32xf32> to vector<1x32xf32>
    %18 = vector.broadcast %17 : vector<1x32xf32> to vector<16x32xf32>
    %19 = arith.addf %15, %18 : vector<16x32xf32>
    %20 = arith.negf %19 : vector<16x32xf32>
    %21 = math.exp %20 : vector<16x32xf32>
    %cst_15 = arith.constant 1.000000e+00 : f32
    %22 = vector.broadcast %cst_15 : f32 to vector<16x32xf32>
    %23 = arith.addf %22, %21 : vector<16x32xf32>
    %24 = arith.divf %22, %23 : vector<16x32xf32>
    %c0_16 = arith.constant 0 : index
    %c0_17 = arith.constant 0 : index
    %c0_18 = arith.constant 0 : index
    %25 = vector.load %arg8[%c0_16, %c0_17, %c0_18] : memref<1x1x32xf32, #tpu.memory_space<vmem>>, vector<1x1x32xf32>
    %26 = vector.shape_cast %25 : vector<1x1x32xf32> to vector<1x32xf32>
    %27 = vector.broadcast %26 : vector<1x32xf32> to vector<16x32xf32>
    %28 = arith.mulf %24, %27 : vector<16x32xf32>
    %29 = math.exp %28 : vector<16x32xf32>
    %30 = arith.mulf %29, %29 : vector<16x32xf32>
    %cst_19 = arith.constant 1.000000e+00 : f32
    %31 = vector.broadcast %cst_19 : f32 to vector<16x32xf32>
    %32 = arith.subf %31, %30 : vector<16x32xf32>
    %33 = math.sqrt %32 : vector<16x32xf32>
    %34 = tpu.iota {dimensions = array<i32: 0>} : vector<16x1xi32>
    %c2_i32 = arith.constant 2 : i32
    %35 = vector.broadcast %c2_i32 : i32 to vector<16x1xi32>
    %36 = arith.cmpi slt, %34, %35 : vector<16x1xi32>
    %c0_i32 = arith.constant 0 : i32
    %37 = arith.cmpi eq, %arg2, %c0_i32 : i32
    %38 = vector.broadcast %37 : i1 to vector<16x1xi1>
    %39 = arith.andi %36, %38 : vector<16x1xi1>
    %cst_20 = arith.constant 1.000000e+00 : f32
    %cst_21 = arith.constant 0.000000e+00 : f32
    %40 = vector.broadcast %cst_20 : f32 to vector<16x1xf32>
    %41 = vector.broadcast %cst_21 : f32 to vector<16x1xf32>
    %42 = arith.select %39, %40, %41 : vector<16x1xi1>, vector<16x1xf32>
    %cst_22 = arith.constant 1.000000e+00 : f32
    %43 = vector.broadcast %cst_22 : f32 to vector<16x1xf32>
    %44 = arith.subf %43, %42 : vector<16x1xf32>
    %45 = vector.broadcast %44 : vector<16x1xf32> to vector<16x32xf32>
    %46 = arith.mulf %29, %45 : vector<16x32xf32>
    %47 = vector.broadcast %44 : vector<16x1xf32> to vector<16x32xf32>
    %48 = arith.mulf %47, %33 : vector<16x32xf32>
    %49 = vector.broadcast %42 : vector<16x1xf32> to vector<16x32xf32>
    %50 = arith.addf %49, %48 : vector<16x32xf32>
    %51 = arith.mulf %0, %12 : vector<16x32xf32>
    %52 = arith.mulf %51, %50 : vector<16x32xf32>
    %c0_23 = arith.constant 0 : index
    %c0_24 = arith.constant 0 : index
    %53 = vector.load %arg10[%c0_23, %c0_24] : memref<16x32xf32, #tpu.memory_space<vmem>>, vector<16x32xf32>
    tpu.vector_store %arg10[%c0_23, %c0_24], %46 {strides = array<i32>} : memref<16x32xf32, #tpu.memory_space<vmem>>, vector<16x32xf32>,
    %c0_25 = arith.constant 0 : index
    %c0_26 = arith.constant 0 : index
    %54 = vector.load %arg11[%c0_25, %c0_26] : memref<16x32xf32, #tpu.memory_space<vmem>>, vector<16x32xf32>
    tpu.vector_store %arg11[%c0_25, %c0_26], %52 {strides = array<i32>} : memref<16x32xf32, #tpu.memory_space<vmem>>, vector<16x32xf32>,
    %c0_i32_27 = arith.constant 0 : i32
    %55 = arith.cmpi eq, %arg2, %c0_i32_27 : i32
    %56 = arith.extui %55 : i1 to i32
    %c0_i32_28 = arith.constant 0 : i32
    %57 = arith.cmpi ne, %56, %c0_i32_28 : i32
    scf.if %57 {
      %cst_67 = arith.constant 0.000000e+00 : f32
      %140 = vector.broadcast %cst_67 : f32 to vector<2x32xf32>
      %c0_68 = arith.constant 0 : index
      %c0_69 = arith.constant 0 : index
      %141 = vector.load %arg12[%c0_68, %c0_69] : memref<2x32xf32, #tpu.memory_space<vmem>>, vector<2x32xf32>
      tpu.vector_store %arg12[%c0_68, %c0_69], %140 {strides = array<i32>} : memref<2x32xf32, #tpu.memory_space<vmem>>, vector<2x32xf32>,
    } else {
    }
    %c0_29 = arith.constant 0 : index
    %c0_30 = arith.constant 0 : index
    %58 = vector.load %arg12[%c0_29, %c0_30] : memref<2x32xf32, #tpu.memory_space<vmem>>, vector<2x32xf32>
    %c0_i32_31 = arith.constant 0 : i32
    %c2_i32_32 = arith.constant 2 : i32
    %59 = arith.muli %c0_i32_31, %c2_i32_32 : i32
    %60 = tpu.assume_multiple %59, 2 : i32
    %61 = arith.index_cast %60 : i32 to index
    %c0_33 = arith.constant 0 : index
    %62 = vector.load %arg10[%61, %c0_33] : memref<16x32xf32, #tpu.memory_space<vmem>>, vector<2x32xf32>
    %63 = arith.mulf %62, %58 : vector<2x32xf32>
    %64 = arith.index_cast %60 : i32 to index
    %c0_34 = arith.constant 0 : index
    %65 = vector.load %arg11[%64, %c0_34] : memref<16x32xf32, #tpu.memory_space<vmem>>, vector<2x32xf32>
    %66 = arith.addf %63, %65 : vector<2x32xf32>
    %67 = arith.index_cast %60 : i32 to index
    %c0_35 = arith.constant 0 : index
    %68 = vector.load %arg9[%67, %c0_35] : memref<16x32xf32, #tpu.memory_space<vmem>>, vector<2x32xf32>
    tpu.vector_store %arg9[%67, %c0_35], %66 {strides = array<i32>} : memref<16x32xf32, #tpu.memory_space<vmem>>, vector<2x32xf32>,
    %c1_i32 = arith.constant 1 : i32
    %c2_i32_36 = arith.constant 2 : i32
    %69 = arith.muli %c1_i32, %c2_i32_36 : i32
    %70 = tpu.assume_multiple %69, 2 : i32
    %71 = arith.index_cast %70 : i32 to index
    %c0_37 = arith.constant 0 : index
    %72 = vector.load %arg10[%71, %c0_37] : memref<16x32xf32, #tpu.memory_space<vmem>>, vector<2x32xf32>
    %73 = arith.mulf %72, %66 : vector<2x32xf32>
    %74 = arith.index_cast %70 : i32 to index
    %c0_38 = arith.constant 0 : index
    %75 = vector.load %arg11[%74, %c0_38] : memref<16x32xf32, #tpu.memory_space<vmem>>, vector<2x32xf32>
    %76 = arith.addf %73, %75 : vector<2x32xf32>
    %77 = arith.index_cast %70 : i32 to index
    %c0_39 = arith.constant 0 : index
    %78 = vector.load %arg9[%77, %c0_39] : memref<16x32xf32, #tpu.memory_space<vmem>>, vector<2x32xf32>
    tpu.vector_store %arg9[%77, %c0_39], %76 {strides = array<i32>} : memref<16x32xf32, #tpu.memory_space<vmem>>, vector<2x32xf32>,
    %c2_i32_40 = arith.constant 2 : i32
    %c2_i32_41 = arith.constant 2 : i32
    %79 = arith.muli %c2_i32_40, %c2_i32_41 : i32
    %80 = tpu.assume_multiple %79, 2 : i32
    %81 = arith.index_cast %80 : i32 to index
    %c0_42 = arith.constant 0 : index
    %82 = vector.load %arg10[%81, %c0_42] : memref<16x32xf32, #tpu.memory_space<vmem>>, vector<2x32xf32>
    %83 = arith.mulf %82, %76 : vector<2x32xf32>
    %84 = arith.index_cast %80 : i32 to index
    %c0_43 = arith.constant 0 : index
    %85 = vector.load %arg11[%84, %c0_43] : memref<16x32xf32, #tpu.memory_space<vmem>>, vector<2x32xf32>
    %86 = arith.addf %83, %85 : vector<2x32xf32>
    %87 = arith.index_cast %80 : i32 to index
    %c0_44 = arith.constant 0 : index
    %88 = vector.load %arg9[%87, %c0_44] : memref<16x32xf32, #tpu.memory_space<vmem>>, vector<2x32xf32>
    tpu.vector_store %arg9[%87, %c0_44], %86 {strides = array<i32>} : memref<16x32xf32, #tpu.memory_space<vmem>>, vector<2x32xf32>,
    %c3_i32 = arith.constant 3 : i32
    %c2_i32_45 = arith.constant 2 : i32
    %89 = arith.muli %c3_i32, %c2_i32_45 : i32
    %90 = tpu.assume_multiple %89, 2 : i32
    %91 = arith.index_cast %90 : i32 to index
    %c0_46 = arith.constant 0 : index
    %92 = vector.load %arg10[%91, %c0_46] : memref<16x32xf32, #tpu.memory_space<vmem>>, vector<2x32xf32>
    %93 = arith.mulf %92, %86 : vector<2x32xf32>
    %94 = arith.index_cast %90 : i32 to index
    %c0_47 = arith.constant 0 : index
    %95 = vector.load %arg11[%94, %c0_47] : memref<16x32xf32, #tpu.memory_space<vmem>>, vector<2x32xf32>
    %96 = arith.addf %93, %95 : vector<2x32xf32>
    %97 = arith.index_cast %90 : i32 to index
    %c0_48 = arith.constant 0 : index
    %98 = vector.load %arg9[%97, %c0_48] : memref<16x32xf32, #tpu.memory_space<vmem>>, vector<2x32xf32>
    tpu.vector_store %arg9[%97, %c0_48], %96 {strides = array<i32>} : memref<16x32xf32, #tpu.memory_space<vmem>>, vector<2x32xf32>,
    %c4_i32 = arith.constant 4 : i32
    %c2_i32_49 = arith.constant 2 : i32
    %99 = arith.muli %c4_i32, %c2_i32_49 : i32
    %100 = tpu.assume_multiple %99, 2 : i32
    %101 = arith.index_cast %100 : i32 to index
    %c0_50 = arith.constant 0 : index
    %102 = vector.load %arg10[%101, %c0_50] : memref<16x32xf32, #tpu.memory_space<vmem>>, vector<2x32xf32>
    %103 = arith.mulf %102, %96 : vector<2x32xf32>
    %104 = arith.index_cast %100 : i32 to index
    %c0_51 = arith.constant 0 : index
    %105 = vector.load %arg11[%104, %c0_51] : memref<16x32xf32, #tpu.memory_space<vmem>>, vector<2x32xf32>
    %106 = arith.addf %103, %105 : vector<2x32xf32>
    %107 = arith.index_cast %100 : i32 to index
    %c0_52 = arith.constant 0 : index
    %108 = vector.load %arg9[%107, %c0_52] : memref<16x32xf32, #tpu.memory_space<vmem>>, vector<2x32xf32>
    tpu.vector_store %arg9[%107, %c0_52], %106 {strides = array<i32>} : memref<16x32xf32, #tpu.memory_space<vmem>>, vector<2x32xf32>,
    %c5_i32 = arith.constant 5 : i32
    %c2_i32_53 = arith.constant 2 : i32
    %109 = arith.muli %c5_i32, %c2_i32_53 : i32
    %110 = tpu.assume_multiple %109, 2 : i32
    %111 = arith.index_cast %110 : i32 to index
    %c0_54 = arith.constant 0 : index
    %112 = vector.load %arg10[%111, %c0_54] : memref<16x32xf32, #tpu.memory_space<vmem>>, vector<2x32xf32>
    %113 = arith.mulf %112, %106 : vector<2x32xf32>
    %114 = arith.index_cast %110 : i32 to index
    %c0_55 = arith.constant 0 : index
    %115 = vector.load %arg11[%114, %c0_55] : memref<16x32xf32, #tpu.memory_space<vmem>>, vector<2x32xf32>
    %116 = arith.addf %113, %115 : vector<2x32xf32>
    %117 = arith.index_cast %110 : i32 to index
    %c0_56 = arith.constant 0 : index
    %118 = vector.load %arg9[%117, %c0_56] : memref<16x32xf32, #tpu.memory_space<vmem>>, vector<2x32xf32>
    tpu.vector_store %arg9[%117, %c0_56], %116 {strides = array<i32>} : memref<16x32xf32, #tpu.memory_space<vmem>>, vector<2x32xf32>,
    %c6_i32 = arith.constant 6 : i32
    %c2_i32_57 = arith.constant 2 : i32
    %119 = arith.muli %c6_i32, %c2_i32_57 : i32
    %120 = tpu.assume_multiple %119, 2 : i32
    %121 = arith.index_cast %120 : i32 to index
    %c0_58 = arith.constant 0 : index
    %122 = vector.load %arg10[%121, %c0_58] : memref<16x32xf32, #tpu.memory_space<vmem>>, vector<2x32xf32>
    %123 = arith.mulf %122, %116 : vector<2x32xf32>
    %124 = arith.index_cast %120 : i32 to index
    %c0_59 = arith.constant 0 : index
    %125 = vector.load %arg11[%124, %c0_59] : memref<16x32xf32, #tpu.memory_space<vmem>>, vector<2x32xf32>
    %126 = arith.addf %123, %125 : vector<2x32xf32>
    %127 = arith.index_cast %120 : i32 to index
    %c0_60 = arith.constant 0 : index
    %128 = vector.load %arg9[%127, %c0_60] : memref<16x32xf32, #tpu.memory_space<vmem>>, vector<2x32xf32>
    tpu.vector_store %arg9[%127, %c0_60], %126 {strides = array<i32>} : memref<16x32xf32, #tpu.memory_space<vmem>>, vector<2x32xf32>,
    %c7_i32 = arith.constant 7 : i32
    %c2_i32_61 = arith.constant 2 : i32
    %129 = arith.muli %c7_i32, %c2_i32_61 : i32
    %130 = tpu.assume_multiple %129, 2 : i32
    %131 = arith.index_cast %130 : i32 to index
    %c0_62 = arith.constant 0 : index
    %132 = vector.load %arg10[%131, %c0_62] : memref<16x32xf32, #tpu.memory_space<vmem>>, vector<2x32xf32>
    %133 = arith.mulf %132, %126 : vector<2x32xf32>
    %134 = arith.index_cast %130 : i32 to index
    %c0_63 = arith.constant 0 : index
    %135 = vector.load %arg11[%134, %c0_63] : memref<16x32xf32, #tpu.memory_space<vmem>>, vector<2x32xf32>
    %136 = arith.addf %133, %135 : vector<2x32xf32>
    %137 = arith.index_cast %130 : i32 to index
    %c0_64 = arith.constant 0 : index
    %138 = vector.load %arg9[%137, %c0_64] : memref<16x32xf32, #tpu.memory_space<vmem>>, vector<2x32xf32>
    tpu.vector_store %arg9[%137, %c0_64], %136 {strides = array<i32>} : memref<16x32xf32, #tpu.memory_space<vmem>>, vector<2x32xf32>,
    %c8_i32 = arith.constant 8 : i32
    %c0_65 = arith.constant 0 : index
    %c0_66 = arith.constant 0 : index
    %139 = vector.load %arg12[%c0_65, %c0_66] : memref<2x32xf32, #tpu.memory_space<vmem>>, vector<2x32xf32>
    tpu.vector_store %arg12[%c0_65, %c0_66], %136 {strides = array<i32>} : memref<2x32xf32, #tpu.memory_space<vmem>>, vector<2x32xf32>,
    return
  }
  func.func @transform_0(%arg0: i32, %arg1: i32, %arg2: i32) -> (i32, i32) {
    %c1_i32 = arith.constant 1 : i32
    %0 = arith.muli %arg1, %c1_i32 : i32
    %1 = arith.addi %0, %arg2 : i32
    %c0_i32 = arith.constant 0 : i32
    return %1, %arg0 : i32, i32
  }
  func.func @transform_1(%arg0: i32, %arg1: i32, %arg2: i32) -> (i32, i32, i32) {
    %c0_i32 = arith.constant 0 : i32
    %c0_i32_0 = arith.constant 0 : i32
    %c0_i32_1 = arith.constant 0 : i32
    return %arg0, %c0_i32, %c0_i32_0 : i32, i32, i32
  }
  func.func @transform_2(%arg0: i32, %arg1: i32, %arg2: i32) -> (i32, i32, i32) {
    %c0_i32 = arith.constant 0 : i32
    %c0_i32_0 = arith.constant 0 : i32
    %c0_i32_1 = arith.constant 0 : i32
    return %arg0, %c0_i32, %c0_i32_0 : i32, i32, i32
  }
  func.func @transform_3(%arg0: i32, %arg1: i32, %arg2: i32) -> (i32, i32, i32) {
    %c0_i32 = arith.constant 0 : i32
    %c0_i32_0 = arith.constant 0 : i32
    %c0_i32_1 = arith.constant 0 : i32
    return %arg0, %c0_i32, %c0_i32_0 : i32, i32, i32
  }
  func.func @transform_4(%arg0: i32, %arg1: i32, %arg2: i32) -> (i32, i32, i32) {
    %c0_i32 = arith.constant 0 : i32
    %c0_i32_0 = arith.constant 0 : i32
    %c0_i32_1 = arith.constant 0 : i32
    return %arg0, %c0_i32, %c0_i32_0 : i32, i32, i32
  }
  func.func @transform_5(%arg0: i32, %arg1: i32, %arg2: i32) -> (i32, i32, i32) {
    %c0_i32 = arith.constant 0 : i32
    %c0_i32_0 = arith.constant 0 : i32
    %c0_i32_1 = arith.constant 0 : i32
    return %arg0, %c0_i32, %c0_i32_0 : i32, i32, i32
  }
  func.func @transform_6(%arg0: i32, %arg1: i32, %arg2: i32) -> (i32, i32) {
    %c1_i32 = arith.constant 1 : i32
    %0 = arith.muli %arg1, %c1_i32 : i32
    %1 = arith.addi %0, %arg2 : i32
    %c0_i32 = arith.constant 0 : i32
    return %1, %arg0 : i32, i32
  }
}

</mosaic_0001>

<bundles_post_ra>
// kernel: tpu_custom_call.1
= control target key start
LH: loop header
LB: loop body
LE: loop exit
PB: predicated region body
PF: predicated region fallthrough
CT: control target
= control target key end

     0   :  { %11 = vsyncpa [#allocation6], 0  ;;  %s761_s0 = inlined_call_operand.hbm [shape: f32[16,32], index: 0, kind: input, shape index: {}]   ;;  %s762_s1 = inlined_call_operand.hbm [shape: f32[1,32,32], index: 1, kind: input, shape index: {}]   ;;  %s763_s2 = inlined_call_operand.vmem [shape: f32[1,1,32], index: 2, kind: input, shape index: {}]   ;;  %s764_s3 = inlined_call_operand.hbm [shape: f32[1,32,32], index: 3, kind: input, shape index: {}]   ;;  %s765_s4 = inlined_call_operand.vmem [shape: f32[1,1,32], index: 4, kind: input, shape index: {}]   ;;  %s766_s5 = inlined_call_operand.vmem [shape: f32[1,1,32], index: 5, kind: input, shape index: {}]   ;;  %s767_s6 = inlined_call_operand.hbm [shape: f32[16,32], index: 6, kind: output, shape index: {}]  }
   0x1   :  { %12 = vsyncpa [#allocation9], 0 }
   0x2   :  { %13 = vsyncpa [#allocation7], 0  ;;  %s615_s21 = smov [#allocation8]   ;;  %s616_s23 = smov [#allocation5]  }
   0x3   :  { %s35_s22 = sshll.u32 %s615_s21, 4  ;;  %s23_s24 = sshll.u32 %s616_s23, 4  ;;  %s36_s22 = int_to_ptr.vmem [resolvable:$true] %s35_s22  ;;  %s657_s24 = int_to_ptr.vmem [resolvable:$true] %s23_s24 }
   0x4   :  { %s521_s27 = scalar_lea.hbm %s762_s1, 512 }
   0x5   :  { %p522_p0 = scmp.ne.s32.totalorder %s762_s1, %s521_s27  ;;  %p525_p1 = scmp.lt.u32.totalorder %s521_s27, %s762_s1 }
   0x7   :  { %p527_p2 = pnand %p525_p1, %p522_p0 }
   0x9   :  { %530 = shalt.err (!%p527_p2)
}
   0xa   :  { %s531_s8 = scalar_lea.vmem %s36_s22, 512  ;;  %p536_p4 = scmp.lt.s32.totalorder %s36_s22, %s36_s22 }
   0xb   :  { %p532_p3 = scmp.ne.s32.totalorder %s36_s22, %s531_s8  ;;  %p537_p5 = scmp.lt.s32.totalorder %s531_s8, %s531_s8 }
   0xd   :  { %p538_p6 = por %p537_p5, %p536_p4 }
   0xf   :  { %p539_p7 = pnand %p538_p6, %p532_p3 }
  0x11   :  { %542 = shalt.err (!%p539_p7)
}
  0x12   :  { %s617_s9 = smov 128   ;;  %s618_s10 = smov 8  }
  0x13   :  { %41 = dma.hbm_to_vmem [thread:$0]  %s762_s1, 512, %s36_s22, [#allocation9], %s617_s9, %s617_s9, %s618_s10  }
  0x14   :  { %s543_s15 = scalar_lea.hbm %s761_s0, 256 }
  0x15   :  { %p544_p8 = scmp.ne.s32.totalorder %s761_s0, %s543_s15  ;;  %p547_p9 = scmp.lt.u32.totalorder %s543_s15, %s761_s0 }
  0x17   :  { %p549_p10 = pnand %p547_p9, %p544_p8 }
  0x19   :  { %552 = shalt.err (!%p549_p10)
}
  0x1a   :  { %s553_s20 = scalar_lea.vmem %s657_s24, 256  ;;  %p558_p12 = scmp.lt.s32.totalorder %s657_s24, %s657_s24 }
  0x1b   :  { %p554_p11 = scmp.ne.s32.totalorder %s657_s24, %s553_s20  ;;  %p559_p13 = scmp.lt.s32.totalorder %s553_s20, %s553_s20 }
  0x1d   :  { %p560_p0 = por %p559_p13, %p558_p12 }
  0x1f   :  { %p561_p1 = pnand %p560_p0, %p554_p11 }
  0x21   :  { %564 = shalt.err (!%p561_p1)
}
  0x22   :  { %29 = dma.hbm_to_vmem [thread:$0]  %s761_s0, 256, %s657_s24, [#allocation6], %s617_s9, %s617_s9, %s618_s10  }
  0x23   :  { %s619_s22 = smov [#allocation10]   ;;  %s565_s27 = scalar_lea.hbm %s764_s3, 512 }
  0x24   :  { %s49_s23 = sshll.u32 %s619_s22, 4  ;;  %p566_p2 = scmp.ne.s32.totalorder %s764_s3, %s565_s27  ;;  %s50_s23 = int_to_ptr.vmem [resolvable:$true] %s49_s23 }
  0x25   :  { %p569_p3 = scmp.lt.u32.totalorder %s565_s27, %s764_s3 }
  0x27   :  { %p571_p4 = pnand %p569_p3, %p566_p2 }
  0x29   :  { %574 = shalt.err (!%p571_p4)
}
  0x2a   :  { %s575_s8 = scalar_lea.vmem %s50_s23, 512  ;;  %p580_p6 = scmp.lt.s32.totalorder %s50_s23, %s50_s23 }
  0x2b   :  { %p576_p5 = scmp.ne.s32.totalorder %s50_s23, %s575_s8  ;;  %p581_p7 = scmp.lt.s32.totalorder %s575_s8, %s575_s8 }
  0x2d   :  { %p582_p8 = por %p581_p7, %p580_p6 }
  0x2f   :  { %p583_p9 = pnand %p582_p8, %p576_p5 }
  0x31   :  { %586 = shalt.err (!%p583_p9)
}
  0x32   :  { %55 = dma.hbm_to_vmem [thread:$0]  %s764_s3, 512, %s50_s23, [#allocation9], %s617_s9, %s617_s9, %s618_s10  }
  0x33   :  { %609 = dma.done.wait [#allocation6], 256  }
  0x34   :  { %610 = vsyncadd [#allocation6], 4294967040 }
  0x35   :  { %611 = dma.done.wait [#allocation9], 1024  }
  0x36   :  { %612 = vsyncadd [#allocation9], 4294966272  ;;  %vm86_vm0 = vcmask 261120   ;;  %v180_v0 = vld [vmem:[#allocation10] sm:$0xff]  ;;  %v181_v1 = vld [vmem:[#allocation10 + $0x8] sm:$0xff]  ;;  %vm341_vm1 = vcmask 254976   ;;  %v309_v33 = vlaneseq }
  0x37   :  { %v182_v2 = vld [vmem:[#allocation10 + $0x10] sm:$0xff]  ;;  %v482_v3 = vpack.c.bf16 %v181_v1, %v180_v0  ;;  %v183_v4 = vld [vmem:[#allocation10 + $0x18] sm:$0xff]  ;;  %v75_v7 = vld [vmem:[#allocation8] sm:$0xff]  ;;  %v620_v14 = vmov 0.0  }
  0x38   :  { %v709_v5 = vld [vmem:[#allocation5] sm:$0xff]  ;;  %v486_v6 = vpack.c.bf16 %v183_v4, %v182_v2  ;;  %v76_v8 = vld [vmem:[#allocation8 + $0x8] sm:$0xff]  ;;  %v78_v11 = vld [vmem:[#allocation8 + $0x18] sm:$0xff]  ;;  %342 = vst.msk [vmem:[#allocation4] sm:$0x3] %vm341_vm1, %v620_v14  ;;  %v310_v40 = vshrl.u32 %v309_v33, 7 }
  0x39   :  { %471 = vmatprep.mubr.msk.f32.mxu1 %vm86_vm0, %v709_v5  ;;  %v77_v9 = vld [vmem:[#allocation8 + $0x10] sm:$0xff]  ;;  %460 = vmatprep.mubr.msk.f32.mxu0 %vm86_vm0, %v709_v5  ;;  %v474_v10 = vpack.c.bf16 %v76_v8, %v75_v7  ;;  %v715_v13 = vld [vmem:[#allocation5 + $0x8] sm:$0xff]  ;;  %v434_v15 = vld [vmem:[%s765_s4] ss:$0 sm:$0xff] }
  0x3a   :  { %483 = vmatprep.subr.bf16.mxu1 %v482_v3  ;;  %v478_v12 = vpack.c.bf16 %v78_v11, %v77_v9  ;;  %v429_v28 = vld [vmem:[%s763_s2] ss:$0 sm:$0xff]  ;;  %vm312_vm2 = vcmp.lt.s32.totalorder %v310_v40, 2  ;;  %s621_s2 = smov [#allocation11]  }
  0x3b   :  { %485 = vmatpush3.bf16.msra.mxu1 %v482_v3  ;;  %475 = vmatprep.subr.bf16.mxu0 %v474_v10  ;;  %v439_v32 = vld [vmem:[%s766_s5] ss:$0 sm:$0xff]  ;;  %v320_v42 = vsel %vm312_vm2, 1.0, %v620_v14  ;;  %s416_s5 = sshll.u32 %s621_s2, 4  ;;  %s417_s5 = int_to_ptr.vmem [resolvable:$true] %s416_s5 }
  0x3c   :  { %487 = vmatprep.subr.bf16.mxu1 %v486_v6  ;;  %477 = vmatpush3.bf16.msra.mxu0 %v474_v10  ;;  %v322_v44 = vsub.f32 1.0, %v320_v42  ;;  %s587_s15 = scalar_lea.vmem %s417_s5, 256  ;;  %p592_p11 = scmp.lt.s32.totalorder %s417_s5, %s417_s5 }
  0x3d   :  { %479 = vmatprep.subr.bf16.mxu0 %v478_v12  ;;  %p588_p10 = scmp.ne.s32.totalorder %s417_s5, %s587_s15  ;;  %p593_p12 = scmp.lt.s32.totalorder %s587_s15, %s587_s15 }
  0x3f   :  { %489 = vmatpush3.bf16.msra.mxu1 %v486_v6  ;;  %v343_v10 = vld [vmem:[#allocation4] sm:$0x3]  ;;  %p594_p13 = por %p593_p12, %p592_p11 }
  0x40   :  { %481 = vmatpush3.bf16.msra.mxu0 %v478_v12 }
  0x41   :  { %p595_p0 = pnand %p594_p13, %p588_p10 }
  0x42   :  { %472 = vmatmul.mubr.msk.f32.vlgmr.msra.gmra.mrb[0].mxu1 %vm86_vm0, %v715_v13 }
  0x43   :  { %461 = vmatmul.mubr.msk.f32.vlgmr.msra.gmra.mrb[0].mxu0 %vm86_vm0, %v715_v13 }
 0x115   :  { %v473_v16 = vpop.f32.mrb[0].mxu1 }
 0x116   :  { %v263_v17 = vadd.f32 %v473_v16, %v434_v15  ;;  %v257_v18 = vpop.f32.mrb[1].mxu1  ;;  %v462_v20 = vpop.f32.mrb[0].mxu0 }
 0x117   :  { %v258_v19 = vadd.f32 %v434_v15, %v257_v18  ;;  %v159_v22 = vpop.f32.mrb[1].mxu0  ;;  %v165_v29 = vadd.f32 %v462_v20, %v429_v28 }
 0x118   :  { %v438_v21 = vmul.f32 -1.442695, %v263_v17  ;;  %v160_v30 = vadd.f32 %v429_v28, %v159_v22 }
 0x119   :  { %v437_v23 = vmul.f32 -1.442695, %v258_v19  ;;  %v433_v31 = vmul.f32 -1.442695, %v165_v29 }
 0x11a   :  { %497 = vpow2.f32 %v438_v21  ;;  %v432_v35 = vmul.f32 -1.442695, %v160_v30 }
 0x11b   :  { %499 = vpow2.f32 %v437_v23 }
 0x124   :  { %v498_v24 = vpop.eup %497 }
 0x125   :  { %v500_v25 = vpop.eup %499  ;;  %v273_v26 = vadd.f32 1.0, %v498_v24 }
 0x126   :  { %v272_v27 = vadd.f32 1.0, %v500_v25 }
 0x127   :  { %501 = vrcp.f32 %v273_v26 }
 0x128   :  { %503 = vrcp.f32 %v272_v27 }
 0x129   :  { %505 = vpow2.f32 %v433_v31 }
 0x12a   :  { %507 = vpow2.f32 %v432_v35 }
 0x131   :  { %v502_v34 = vpop.eup %501 }
 0x132   :  { %v504_v36 = vpop.eup %503  ;;  %v286_v37 = vmul.f32 %v502_v34, %v439_v32 }
 0x133   :  { %v285_v38 = vmul.f32 %v504_v36, %v439_v32  ;;  %v506_v43 = vpop.eup %505 }
 0x134   :  { %v289_v39 = vmul.f32 1.442695, %v286_v37  ;;  %v508_v45 = vpop.eup %507  ;;  %v175_v46 = vadd.f32 1.0, %v506_v43 }
 0x135   :  { %v287_v41 = vmul.f32 1.442695, %v285_v38  ;;  %v174_v54 = vadd.f32 1.0, %v508_v45 }
 0x136   :  { %509 = vpow2.f32 %v289_v39 }
 0x137   :  { %511 = vpow2.f32 %v287_v41 }
 0x138   :  { %513 = vrcp.f32 %v175_v46 }
 0x140   :  { %v510_v47 = vpop.eup %509 }
 0x141   :  { %v512_v48 = vpop.eup %511  ;;  %v292_v49 = vmul.f32 %v510_v47, %v510_v47  ;;  %335 = vst.msk [vmem:[#allocation2 + $0x8] sm:$0xff] %vm86_vm0, %v510_v47 }
 0x142   :  { %v291_v50 = vmul.f32 %v512_v48, %v512_v48  ;;  %v324_v51 = vmul.f32 %v512_v48, %v322_v44  ;;  %v514_v55 = vpop.eup %513 }
 0x143   :  { %v294_v52 = vsub.f32 1.0, %v292_v49  ;;  %v331_v59 = vmul.f32 %v514_v55, %v715_v13 }
 0x144   :  { %v293_v53 = vsub.f32 1.0, %v291_v50  ;;  %334 = vst.msk [vmem:[#allocation2] sm:$0xff] %vm86_vm0, %v324_v51 }
 0x145   :  { %515 = vrsqrt.f32 %v294_v52  ;;  %vm304_vm3 = vcmp.eq.f32.partialorder %v294_v52, inf  ;;  %v307_v60 = vand.u32 2147483648, %v294_v52  ;;  %vm306_vm4 = vcmp.eq.f32.partialorder %v294_v52, 0.0 }
 0x146   :  { %517 = vrsqrt.f32 %v293_v53  ;;  %vm297_vm5 = vcmp.eq.f32.partialorder %v293_v53, inf  ;;  %v300_v0 = vand.u32 2147483648, %v293_v53  ;;  %vm299_vm6 = vcmp.eq.f32.partialorder %v293_v53, 0.0 }
 0x147   :  { %519 = vrcp.f32 %v174_v54 }
 0x148   :  { %v375_v26 = vld [vmem:[#allocation2 + $0x8] sm:$0x3]  ;;  %v383_v30 = vld [vmem:[#allocation2 + $0xa] sm:$0x3]  ;;  %v391_v34 = vld [vmem:[#allocation2 + $0xc] sm:$0x3] }
 0x149   :  { %v399_v38 = vld [vmem:[#allocation2 + $0xe] sm:$0x3] }
 0x14b   :  { %v344_v11 = vld [vmem:[#allocation2] sm:$0x3]  ;;  %v351_v15 = vld [vmem:[#allocation2 + $0x2] sm:$0x3]  ;;  %v359_v19 = vld [vmem:[#allocation2 + $0x4] sm:$0x3] }
 0x14c   :  { %v345_v12 = vmul.f32 %v344_v11, %v343_v10  ;;  %v367_v22 = vld [vmem:[#allocation2 + $0x6] sm:$0x3] }
 0x14f   :  { %v516_v56 = vpop.eup %515 }
 0x150   :  { %v518_v57 = vpop.eup %517  ;;  %v303_v58 = vmul.f32 %v516_v56, %v294_v52 }
 0x151   :  { %v296_v61 = vmul.f32 %v518_v57, %v293_v53  ;;  %v520_v62 = vpop.eup %519 }
 0x152   :  { %v305_v63 = vsel %vm304_vm3, %v294_v52, %v303_v58  ;;  %v330_v7 = vmul.f32 %v520_v62, %v709_v5 }
 0x153   :  { %v308_v1 = vsel %vm306_vm4, %v307_v60, %v305_v63  ;;  %v298_v2 = vsel %vm297_vm5, %v293_v53, %v296_v61 }
 0x154   :  { %v333_v3 = vmul.f32 %v331_v59, %v308_v1  ;;  %v301_v4 = vsel %vm299_vm6, %v300_v0, %v298_v2 }
 0x155   :  { %v326_v6 = vmul.f32 %v322_v44, %v301_v4 }
 0x156   :  { %337 = vst.msk [vmem:[#allocation3 + $0x8] sm:$0xff] %vm86_vm0, %v333_v3 }
 0x157   :  { %v328_v8 = vadd.f32 %v326_v6, %v320_v42 }
 0x159   :  { %v332_v9 = vmul.f32 %v330_v7, %v328_v8 }
 0x15b   :  { %336 = vst.msk [vmem:[#allocation3] sm:$0xff] %vm86_vm0, %v332_v9 }
 0x15d   :  { %v378_v28 = vld [vmem:[#allocation3 + $0x8] sm:$0x3]  ;;  %v386_v32 = vld [vmem:[#allocation3 + $0xa] sm:$0x3]  ;;  %v394_v36 = vld [vmem:[#allocation3 + $0xc] sm:$0x3] }
 0x15e   :  { %v402_v40 = vld [vmem:[#allocation3 + $0xe] sm:$0x3] }
 0x162   :  { %v346_v13 = vld [vmem:[#allocation3] sm:$0x3]  ;;  %v354_v17 = vld [vmem:[#allocation3 + $0x2] sm:$0x3]  ;;  %v362_v20 = vld [vmem:[#allocation3 + $0x4] sm:$0x3] }
 0x163   :  { %v347_v14 = vadd.f32 %v346_v13, %v345_v12  ;;  %v370_v24 = vld [vmem:[#allocation3 + $0x6] sm:$0x3] }
 0x165   :  { %349 = vst.msk [vmem:[#allocation11] sm:$0x3] %vm341_vm1, %v347_v14  ;;  %v352_v16 = vmul.f32 %v351_v15, %v347_v14 }
 0x167   :  { %v355_v18 = vadd.f32 %v354_v17, %v352_v16 }
 0x169   :  { %357 = vst.msk [vmem:[#allocation11 + $0x2] sm:$0x3] %vm341_vm1, %v355_v18  ;;  %v360_v5 = vmul.f32 %v359_v19, %v355_v18 }
 0x16b   :  { %v363_v21 = vadd.f32 %v362_v20, %v360_v5 }
 0x16d   :  { %365 = vst.msk [vmem:[#allocation11 + $0x4] sm:$0x3] %vm341_vm1, %v363_v21  ;;  %v368_v23 = vmul.f32 %v367_v22, %v363_v21 }
 0x16f   :  { %v371_v25 = vadd.f32 %v370_v24, %v368_v23 }
 0x171   :  { %373 = vst.msk [vmem:[#allocation11 + $0x6] sm:$0x3] %vm341_vm1, %v371_v25  ;;  %v376_v27 = vmul.f32 %v375_v26, %v371_v25 }
 0x173   :  { %v379_v29 = vadd.f32 %v378_v28, %v376_v27 }
 0x175   :  { %381 = vst.msk [vmem:[#allocation11 + $0x8] sm:$0x3] %vm341_vm1, %v379_v29  ;;  %v384_v31 = vmul.f32 %v383_v30, %v379_v29 }
 0x177   :  { %v387_v33 = vadd.f32 %v386_v32, %v384_v31 }
 0x179   :  { %389 = vst.msk [vmem:[#allocation11 + $0xa] sm:$0x3] %vm341_vm1, %v387_v33  ;;  %v392_v35 = vmul.f32 %v391_v34, %v387_v33 }
 0x17b   :  { %v395_v37 = vadd.f32 %v394_v36, %v392_v35 }
 0x17d   :  { %397 = vst.msk [vmem:[#allocation11 + $0xc] sm:$0x3] %vm341_vm1, %v395_v37  ;;  %v400_v39 = vmul.f32 %v399_v38, %v395_v37 }
 0x17f   :  { %v403_v41 = vadd.f32 %v402_v40, %v400_v39 }
 0x181   :  { %405 = vst.msk [vmem:[#allocation11 + $0xe] sm:$0x3] %vm341_vm1, %v403_v41  ;;  %406 = vst.msk [vmem:[#allocation4] sm:$0x3] %vm341_vm1, %v403_v41 }
 0x182   :  { %598 = shalt.err (!%p595_p0)
}
 0x183   :  { %s599_s18 = scalar_lea.hbm %s767_s6, 256 }
 0x184   :  { %p600_p1 = scmp.ne.s32.totalorder %s767_s6, %s599_s18  ;;  %p603_p2 = scmp.lt.u32.totalorder %s599_s18, %s767_s6 }
 0x186   :  { %p605_p3 = pnand %p603_p2, %p600_p1 }
 0x188   :  { %608 = shalt.err (!%p605_p3)
}
 0x189   :  { %422 = dma.vmem_to_hbm [thread:$0]  %s417_s5, 256, %s767_s6, [#allocation7], %s617_s9, %s617_s9, %s618_s10  }
 0x18a   :  { %613 = dma.done.wait [#allocation7], 256  }
 0x18b   :  { %614 = vsyncadd [#allocation7], 4294967040 }
 0x18c   :  { %426 = vsyncpa [#allocation6], 1 }
 0x18d   :  { %427 = vsyncpa [#allocation9], 1 }
 0x18e   :  { %428 = vsyncpa [#allocation7], 1 }

</bundles_post_ra>
